<compile_context>
chip_gen: v7x
topology: tpu7x:2x2x1
jax: 0.10.0
libtpu: 0.0.40
codegen_flags: <defaults>
</compile_context>

<pallas_src>
import functools

import jax
import jax.numpy as jnp
from jax.experimental import pallas as pl
from jax.experimental.pallas import tpu as pltpu


def _round_up(x, m):
    return ((x + m - 1) // m) * m


def _generation_config():
    """Returns (tile_byte_budget, vmem_limit_bytes, tensorcores_per_chip)."""
    kind = ""
    try:
        kind = jax.devices()[0].device_kind.lower()
    except Exception:  # pragma: no cover - defensive
        pass
    if "v7" in kind:
        # 64 MiB VMEM per TC, 2 TCs/chip: small tiles, modest scoped limit,
        # make sure the parallel row axis has >= 2 blocks.
        return 4 << 20, 48 << 20, 2
    if "v6" in kind or "v5" in kind:
        # 128 MiB physical VMEM, 1 TC: bigger tiles + higher scoped limit.
        return 8 << 20, 64 << 20, 1
    # Unknown generation: conservative settings that are safe everywhere
    # (including v7x's 64 MiB-per-TC VMEM).
    return 4 << 20, 48 << 20, 2


# --------------------------------------------------------------------------
# Fast path: the whole class axis fits in one tile.
# --------------------------------------------------------------------------
def _ls_kernel(logits_ref, target_ref, out_ref, *,
               w_true, w_other, lse_coeff, n_rows):
    i = pl.program_id(0)
    x = logits_ref[...].astype(jnp.float32)            # (TM, C), cast per tile
    tgt = target_ref[...]                               # (TM, 1) int32
    TM, C = x.shape

    # Row-wise log-sum-exp.
    m = jnp.max(x, axis=-1, keepdims=True)
    lse = m + jnp.log(jnp.sum(jnp.exp(x - m), axis=-1, keepdims=True))

    # Single fused weighted reduction replaces separate sum_x / x[target].
    col = jax.lax.broadcasted_iota(jnp.int32, (TM, C), 1)
    w = jnp.where(col == tgt, w_true, w_other)
    wsum = jnp.sum(x * w, axis=-1, keepdims=True)

    total = lse_coeff * lse + wsum                      # (TM, 1) per-row loss

    # Mask padded rows of the last (partial) tile; /N happens in the wrapper.
    row = i * TM + jax.lax.broadcasted_iota(jnp.int32, (TM, 1), 0)
    total = jnp.where(row < n_rows, total, 0.0)

    # Lane-dense (1, 8, 128) block write -> unmasked stores.
    out_ref[...] = jnp.full(out_ref.shape, jnp.sum(total), dtype=jnp.float32)


# --------------------------------------------------------------------------
# Big-C path: class axis tiled, online (flash-style) log-sum-exp accumulation.
# --------------------------------------------------------------------------
def _ls_kernel_ctiled(logits_ref, target_ref, out_ref,
                      m_sc, l_sc, w_sc, *,
                      w_true, w_other, lse_coeff, n_rows, n_cols):
    i = pl.program_id(0)
    j = pl.program_id(1)
    nj = pl.num_programs(1)

    @pl.when(j == 0)
    def _():
        m_sc[...] = jnp.full_like(m_sc, -jnp.inf)
        l_sc[...] = jnp.zeros_like(l_sc)
        w_sc[...] = jnp.zeros_like(w_sc)

    x = logits_ref[...].astype(jnp.float32)             # (TM, TC)
    tgt = target_ref[...]                                # (TM, 1) int32
    TM, TC = x.shape

    col = j * TC + jax.lax.broadcasted_iota(jnp.int32, (TM, TC), 1)
    valid = col < n_cols
    x_lse = jnp.where(valid, x, -jnp.inf)                # padded cols -> -inf
    x_zero = jnp.where(valid, x, 0.0)                    # padded cols -> 0

    # Online log-sum-exp update.
    m_prev = m_sc[...]
    m_new = jnp.maximum(m_prev, jnp.max(x_lse, axis=-1, keepdims=True))
    corr = jnp.exp(m_prev - m_new)
    l_sc[...] = corr * l_sc[...] + jnp.sum(jnp.exp(x_lse - m_new),
                                           axis=-1, keepdims=True)
    m_sc[...] = m_new

    # Fused weighted data sum accumulation.
    w = jnp.where(col == tgt, w_true, w_other)
    w = jnp.where(valid, w, 0.0)
    w_sc[...] = w_sc[...] + jnp.sum(x_zero * w, axis=-1, keepdims=True)

    @pl.when(j == nj - 1)
    def _():
        lse = m_sc[...] + jnp.log(l_sc[...])
        total = lse_coeff * lse + w_sc[...]
        row = i * TM + jax.lax.broadcasted_iota(jnp.int32, (TM, 1), 0)
        total = jnp.where(row < n_rows, total, 0.0)
        out_ref[...] = jnp.full(out_ref.shape, jnp.sum(total),
                                dtype=jnp.float32)


def label_smoothing_loss(logits, target, *, alpha=0.01, kl_weight=0.2,
                         block_rows=None, block_cols=None):
    """Pallas TPU implementation of LabelSmoothingLoss(CrossEntropyLoss()).

    logits: (N, C) float (any dtype, kept native in HBM), target: (N,) int
    class indices. Returns a scalar float32.
    """
    N, C = logits.shape
    if C < 2:
        raise ValueError("LabelSmoothingLoss requires at least 2 classes.")
    confidence = 1.0 - alpha
    off = alpha / (C - 1)

    # Fused per-column weights. Using sum_c(true_dist) == 1:
    #   total_row = ce + kw*kl
    #             = (1-kw)*lse + kw*off*sum_x + x_t*(kw*(confidence-off) - 1)
    #             = (1-kw)*lse + sum_c x_c * w_c,
    #   w_c = kw*off (c != t),  w_t = kw*confidence - 1.
    w_other = float(kl_weight * off)
    w_true = float(kl_weight * confidence - 1.0)
    lse_coeff = float(1.0 - kl_weight)

    target2d = target.astype(jnp.int32).reshape(N, 1)
    itemsize = jnp.dtype(logits.dtype).itemsize
    # Full-vreg sublane multiple per dtype: 8 (f32), 16 (bf16), 32 (i8/fp8).
    sub = 8 * max(1, 4 // itemsize)

    budget, vmem_limit, n_cores = _generation_config()

    # Decide whether the class axis needs tiling (huge-vocab case), or if the
    # caller explicitly requested it.
    tile_c = (sub * C * itemsize) > budget
    if block_cols is not None and block_cols < C:
        tile_c = True

    if tile_c:
        tc = block_cols if block_cols is not None else 2048
        tc = max(128, (tc // 128) * 128)
        tc = min(tc, _round_up(C, 128))
    else:
        tc = C

    # Row tile: fill the byte budget (no artificial row cap), rounded to the
    # dtype sublane multiple; keep >= 2 blocks on multi-TC chips.
    if block_rows is not None:
        tm = max(8, (int(block_rows) // 8) * 8)
    else:
        row_bytes = tc * itemsize
        tm = max(sub, (budget // max(1, row_bytes)) // sub * sub)
        tm = min(tm, _round_up(N, sub))
        if n_cores > 1 and N > sub:
            tm = min(tm, _round_up(pl.cdiv(N, n_cores), sub))
    num_row_blocks = pl.cdiv(N, tm)

    cost = pl.CostEstimate(
        flops=5 * N * C,
        transcendentals=N * C,                          # exp on every element
        bytes_accessed=N * C * itemsize + N * 4 + num_row_blocks * 8 * 128 * 4,
    )
    out_shape = jax.ShapeDtypeStruct((num_row_blocks, 8, 128), jnp.float32)

    if not tile_c:
        kernel = functools.partial(
            _ls_kernel, w_true=w_true, w_other=w_other,
            lse_coeff=lse_coeff, n_rows=int(N))
        partials = pl.pallas_call(
            kernel,
            out_shape=out_shape,
            grid=(num_row_blocks,),
            in_specs=[
                pl.BlockSpec((tm, C), lambda i: (i, 0)),
                pl.BlockSpec((tm, 1), lambda i: (i, 0)),
            ],
            out_specs=pl.BlockSpec((1, 8, 128), lambda i: (i, 0, 0)),
            compiler_params=pltpu.CompilerParams(
                dimension_semantics=("parallel",),
                vmem_limit_bytes=vmem_limit,
            ),
            cost_estimate=cost,
        )(logits, target2d)
    else:
        num_col_blocks = pl.cdiv(C, tc)
        kernel = functools.partial(
            _ls_kernel_ctiled, w_true=w_true, w_other=w_other,
            lse_coeff=lse_coeff, n_rows=int(N), n_cols=int(C))
        partials = pl.pallas_call(
            kernel,
            out_shape=out_shape,
            grid=(num_row_blocks, num_col_blocks),
            in_specs=[
                pl.BlockSpec((tm, tc), lambda i, j: (i, j)),
                pl.BlockSpec((tm, 1), lambda i, j: (i, 0)),
            ],
            out_specs=pl.BlockSpec((1, 8, 128), lambda i, j: (i, 0, 0)),
            scratch_shapes=[pltpu.VMEM((tm, 1), jnp.float32)] * 3,
            compiler_params=pltpu.CompilerParams(
                dimension_semantics=("parallel", "arbitrary"),
                vmem_limit_bytes=vmem_limit,
            ),
            cost_estimate=cost,
        )(logits, target2d)

    return jnp.sum(partials[:, 0, 0]) / N


def _reference(logits, target, *, alpha=0.01, kl_weight=0.2):
    """Pure-JAX reference mirroring the PyTorch module."""
    N, C = logits.shape
    confidence = 1.0 - alpha
    log_p = jax.nn.log_softmax(logits.astype(jnp.float32), axis=-1)
    onehot = jax.nn.one_hot(target, C, dtype=jnp.float32)
    loss = jnp.mean(-jnp.sum(onehot * log_p, axis=-1))        # CrossEntropy, mean
    true_dist = jnp.where(onehot > 0, confidence, alpha / (C - 1))
    kl_loss = jnp.mean(jnp.sum(true_dist * log_p, axis=-1))
    return loss + kl_loss * kl_weight


if __name__ == "__main__":
    key = jax.random.PRNGKey(0)
    k1, k2, k3, k4, k5, k6 = jax.random.split(key, 6)

    # Case 1: f32 logits, fast path, N divisible by the row tile (3 grid steps).
    N1, C1 = 24, 8
    logits1 = jax.random.normal(k1, (N1, C1), dtype=jnp.float32)
    target1 = jax.random.randint(k2, (N1,), 0, C1, dtype=jnp.int32)
    out1 = jax.block_until_ready(
        label_smoothing_loss(logits1, target1, alpha=0.01, kl_weight=0.2,
                             block_rows=8))
    ref1 = _reference(logits1, target1, alpha=0.01, kl_weight=0.2)
    assert jnp.allclose(out1, ref1, atol=1e-4, rtol=1e-4), (out1, ref1)

    # Case 2: bf16 logits kept native in HBM, ragged N, auto tile heuristic
    # (last row tile padded + masked).
    N2, C2 = 20, 16
    logits2 = jax.random.normal(k3, (N2, C2), dtype=jnp.bfloat16)
    target2 = jax.random.randint(k4, (N2,), 0, C2, dtype=jnp.int32)
    out2 = jax.block_until_ready(
        label_smoothing_loss(logits2, target2, alpha=0.01, kl_weight=0.2))
    ref2 = _reference(logits2, target2, alpha=0.01, kl_weight=0.2)
    assert jnp.allclose(out2, ref2, atol=1e-4, rtol=1e-4), (out2, ref2)

    # Case 3: class-tiled (online log-sum-exp) path, C not a multiple of the
    # column tile (padded columns masked), ragged N.
    N3, C3 = 20, 300
    logits3 = jax.random.normal(k5, (N3, C3), dtype=jnp.float32)
    target3 = jax.random.randint(k6, (N3,), 0, C3, dtype=jnp.int32)
    out3 = jax.block_until_ready(
        label_smoothing_loss(logits3, target3, alpha=0.01, kl_weight=0.2,
                             block_rows=8, block_cols=128))
    ref3 = _reference(logits3, target3, alpha=0.01, kl_weight=0.2)
    assert jnp.allclose(out3, ref3, atol=1e-4, rtol=1e-4), (out3, ref3)

    # TODO(synk): ignore_index / out-of-range target checking (PyTorch errors)
    # is not implemented; out-of-range targets contribute 0 to the x[t] term.
    print("KERNEL_OK")
</pallas_src>

<mosaic_0001>
module attributes {stable_mosaic.version = 11 : i64} {
  func.func @_ls_kernel(%arg0: i32, %arg1: memref<8x8xf32, #tpu.memory_space<vmem>>, %arg2: memref<8x1xi32, #tpu.memory_space<vmem>>, %arg3: memref<1x8x128xf32, #tpu.memory_space<vmem>>) attributes {dimension_semantics = [#tpu.dimension_semantics<parallel>], iteration_bounds = array<i64: 3>, scalar_prefetch = 0 : i64, scratch_operands = 0 : i64, tpu.core_type = #tpu.core_type<tc>, window_params = [{transform_indices = @transform_0, window_bounds = array<i64: 8, 8>}, {transform_indices = @transform_1, window_bounds = array<i64: 8, 1>}, {transform_indices = @transform_2, window_bounds = array<i64: 1, 8, 128>}]} {
    %c0 = arith.constant 0 : index
    %c0_0 = arith.constant 0 : index
    %0 = vector.load %arg1[%c0, %c0_0] : memref<8x8xf32, #tpu.memory_space<vmem>>, vector<8x8xf32>
    %c0_1 = arith.constant 0 : index
    %c0_2 = arith.constant 0 : index
    %1 = vector.load %arg2[%c0_1, %c0_2] : memref<8x1xi32, #tpu.memory_space<vmem>>, vector<8x1xi32>
    %cst = arith.constant dense<0xFF800000> : vector<8xf32>
    %2 = vector.multi_reduction <maximumf>, %0, %cst [1] : vector<8x8xf32> to vector<8xf32>
    %3 = vector.shape_cast %2 : vector<8xf32> to vector<8x1xf32>
    %4 = vector.broadcast %3 : vector<8x1xf32> to vector<8x8xf32>
    %5 = arith.subf %0, %4 : vector<8x8xf32>
    %6 = math.exp %5 : vector<8x8xf32>
    %cst_3 = arith.constant dense<0.000000e+00> : vector<8xf32>
    %7 = vector.multi_reduction <add>, %6, %cst_3 [1] : vector<8x8xf32> to vector<8xf32>
    %8 = vector.shape_cast %7 : vector<8xf32> to vector<8x1xf32>
    %9 = math.log %8 : vector<8x1xf32>
    %10 = arith.addf %3, %9 : vector<8x1xf32>
    %11 = tpu.iota {dimensions = array<i32: 1>} : vector<8x8xi32>
    %12 = vector.broadcast %1 : vector<8x1xi32> to vector<8x8xi32>
    %13 = arith.cmpi eq, %11, %12 : vector<8x8xi32>
    %cst_4 = arith.constant -0.801999986 : f32
    %cst_5 = arith.constant 2.85714283E-4 : f32
    %14 = vector.broadcast %cst_4 : f32 to vector<8x8xf32>
    %15 = vector.broadcast %cst_5 : f32 to vector<8x8xf32>
    %16 = arith.select %13, %14, %15 : vector<8x8xi1>, vector<8x8xf32>
    %17 = arith.mulf %0, %16 : vector<8x8xf32>
    %cst_6 = arith.constant dense<0.000000e+00> : vector<8xf32>
    %18 = vector.multi_reduction <add>, %17, %cst_6 [1] : vector<8x8xf32> to vector<8xf32>
    %19 = vector.shape_cast %18 : vector<8xf32> to vector<8x1xf32>
    %cst_7 = arith.constant 8.000000e-01 : f32
    %20 = vector.broadcast %cst_7 : f32 to vector<8x1xf32>
    %21 = arith.mulf %20, %10 : vector<8x1xf32>
    %22 = arith.addf %21, %19 : vector<8x1xf32>
    %c8_i32 = arith.constant 8 : i32
    %23 = arith.muli %arg0, %c8_i32 : i32
    %24 = tpu.iota {dimensions = array<i32: 0>} : vector<8x1xi32>
    %25 = vector.broadcast %23 : i32 to vector<8x1xi32>
    %26 = arith.addi %25, %24 : vector<8x1xi32>
    %c24_i32 = arith.constant 24 : i32
    %27 = vector.broadcast %c24_i32 : i32 to vector<8x1xi32>
    %28 = arith.cmpi slt, %26, %27 : vector<8x1xi32>
    %cst_8 = arith.constant 0.000000e+00 : f32
    %29 = vector.broadcast %cst_8 : f32 to vector<8x1xf32>
    %30 = arith.select %28, %22, %29 : vector<8x1xi1>, vector<8x1xf32>
    %31 = vector.shape_cast %30 : vector<8x1xf32> to vector<1x8x1xf32>
    %cst_9 = arith.constant dense<0.000000e+00> : vector<1xf32>
    %32 = vector.multi_reduction <add>, %31, %cst_9 [1, 2] : vector<1x8x1xf32> to vector<1xf32>
    %33 = vector.shape_cast %32 : vector<1xf32> to vector<1x1x1xf32>
    %34 = vector.extract %33[0, 0, 0] : f32 from vector<1x1x1xf32>
    %35 = vector.broadcast %34 : f32 to vector<1x8x128xf32>
    %c0_10 = arith.constant 0 : index
    %c0_11 = arith.constant 0 : index
    %c0_12 = arith.constant 0 : index
    %36 = vector.load %arg3[%c0_10, %c0_11, %c0_12] : memref<1x8x128xf32, #tpu.memory_space<vmem>>, vector<1x8x128xf32>
    tpu.vector_store %arg3[%c0_10, %c0_11, %c0_12], %35 {strides = array<i32>} : memref<1x8x128xf32, #tpu.memory_space<vmem>>, vector<1x8x128xf32>,
    return
  }
  func.func @transform_0(%arg0: i32) -> (i32, i32) {
    %c0_i32 = arith.constant 0 : i32
    %c0_i32_0 = arith.constant 0 : i32
    return %arg0, %c0_i32 : i32, i32
  }
  func.func @transform_1(%arg0: i32) -> (i32, i32) {
    %c0_i32 = arith.constant 0 : i32
    %c0_i32_0 = arith.constant 0 : i32
    return %arg0, %c0_i32 : i32, i32
  }
  func.func @transform_2(%arg0: i32) -> (i32, i32, i32) {
    %c0_i32 = arith.constant 0 : i32
    %c0_i32_0 = arith.constant 0 : i32
    %c0_i32_1 = arith.constant 0 : i32
    return %arg0, %c0_i32, %c0_i32_0 : i32, i32, i32
  }
}

</mosaic_0001>

<bundles_post_ra>
// kernel: tpu_custom_call.1
= control target key start
LH: loop header
LB: loop body
LE: loop exit
PB: predicated region body
PF: predicated region fallthrough
CT: control target
= control target key end

     0   :  { %7 = vsyncpa [#allocation3], 0  ;;  %s538_s0 = inlined_call_operand.vmem [shape: f32[24,8], index: 0, kind: input, shape index: {}]   ;;  %s539_s1 = inlined_call_operand.vmem [shape: s32[24,1], index: 1, kind: input, shape index: {}]   ;;  %s540_s2 = inlined_call_operand.hbm [shape: f32[3,8,128], index: 2, kind: output, shape index: {}]  }
   0x1   :  { %9 = vsyncpa [#allocation3 + $0x1], 0  ;;  %s431_s9 = smov 0   ;;  %s433_s10 = smov 0  }
   0x2   :  { %s435_s11 = smov 0   ;;  %s437_s12 = smov 0  }
   0x3 LB: > { %s452_s13 = sadd.s32 4294967295, %s411_s12   ;;  %s289_s14 = sadd.s32 4294967294, %s411_s12   ;;  %s411_s12 = sphi %s437_s12, %s546_s12   ;;  %s407_s11 = sphi %s435_s11, %s545_s11   ;;  %s403_s10 = sphi %s433_s10, %s544_s10   ;;  %s399_s9 = sphi %s431_s9, %s543_s9  }
   0x4   : > { %s456_s15 = sadd.s32 1, %s411_s12   ;;  %s74_s16 = sadd.s32 1, %s407_s11 }
   0x5   : > { %s71_s17 = ssub.s32 %s411_s12, %s456_s15  ;;  %p84_p0 = scmp.ne.s32.totalorder %s407_s11, %s403_s10 }
   0x6   : > { %p72_p1 = scmp.eq.s32.totalorder %s71_s17, 0  ;;  %p85_p2 = scmp.eq.s32.totalorder %s452_s13, 2 }
   0x7   : > { %p90_p3 = scmp.ne.s32.totalorder %s403_s10, %s399_s9  ;;  %p91_p4 = scmp.eq.s32.totalorder %s289_s14, 2 }
   0x8   : > { %s467_s18 = scalar_select %p72_p1, %s407_s11, %s74_s16  }
   0x9   : > { %p469_p5 = por %p85_p2, %p84_p0  ;;  %p473_p6 = por %p91_p4, %p90_p3 }
   0xa   : > { %p292_p7 = scmp.ge.s32.totalorder %s411_s12, 1  ;;  %p123_p8 = scmp.lt.s32.totalorder %s411_s12, 4 }
   0xc   : > { %p124_p9 = pnand %p292_p7, %p123_p8 }
   0xd   : > { %p148_p10 = scmp.lt.s32.totalorder (!%p124_p9), %s452_s13, 2  ;;  %v413_v0 = vmov (!%p124_p9), 0   ;;  %vm158_vm0 = vcmask (!%p124_p9), 64512   ;;  %v171_v6 = vlaneseq (!%p124_p9)  ;;  %v414_v10 = vmov (!%p124_p9), 0.00028571428   ;;  %s296_s29 = sshll.u32 (!%p124_p9), %s452_s13, 3 }
   0xe   : > { %127 = sbr.rel (%p124_p9) target bundleno = 567 (0x237), region = 28  ;;  %344 = vset.pattern.permute.xlu0 (!%p124_p9), %v413_v0  ;;  %v187_v18 = vstv (!%p124_p9), %s296_s29  ;;  %vm191_vm3 = vcmask (!%p124_p9), 7168   ;;  %s145_s30 = sand.u32 (!%p124_p9), 1, %s403_s10  }
   0xf   : > { %v172_v8 = vand.u32 (!%p124_p9), 127, %v171_v6  ;;  %v186_v17 = vshrl.u32 (!%p124_p9), %v171_v6, 7  ;;  %s293_s3 = sshll.u32 (!%p124_p9), %s145_s30, 3  ;;  %s298_s6 = sshll.u32 (!%p124_p9), %s452_s13, 7 }
  0x10   : > { %s147_s4 = scalar_lea.vmem (!%p124_p9), [#allocation2], %s293_s3  ;;  %s498_s16 = scalar_lea.hbm (!%p124_p9), %s540_s2, %s298_s6 }
  0x11   : > { %v188_v21 = vadd.s32 (!%p124_p9), %v187_v18, %v186_v17  ;;  %s218_s5 = sshll.u32 (!%p124_p9), %s147_s4, 4  ;;  %s205_s17 = scalar_lea.sflag (!%p124_p9), [#allocation3], %s145_s30  ;;  %s493_s5 = int_to_ptr.vmem [resolvable:$true] %s218_s5 }
  0x13   : > { %vm189_vm2 = vcmp.lt.s32.totalorder (!%p124_p9), %v188_v21, 24 }
  0x15   : > { %s149_s21 = scalar_select %p148_p10, %s452_s13, 2 }
  0x16   : > { %s415_s13 = smov [#allocation2]  }
  0x17   : > { %s294_s22 = sshll.u32 %s149_s21, 3  ;;  %s349_s21 = scalar_lea.vmem %s493_s5, 128 }
  0x18   : > { %s151_s25 = scalar_lea.vmem %s538_s0, %s294_s22  ;;  %s155_s28 = scalar_lea.vmem %s539_s1, %s294_s22 }
  0x19   : > { %v156_v1 = vld [vmem:[%s151_s25] sm:$0xff]  ;;  %p350_p11 = scmp.ne.s32.totalorder %s493_s5, %s349_s21  ;;  %s353_s22 = sshll.u32 %s415_s13, 4  ;;  %s354_s22 = int_to_ptr.vmem [resolvable:$false] %s353_s22 }
  0x1a   : > { %v159_v2 = vsel %vm158_vm0, %v156_v1, -inf  ;;  %v157_v3 = vld [vmem:[%s155_s28] sm:$0xff]  ;;  %s355_s23 = scalar_lea.vmem %s354_s22, 256  ;;  %p356_p0 = scmp.lt.s32.totalorder %s493_s5, %s354_s22 }
  0x1b   : > { %160 = vmax.xlane.f32.xlu0 %v159_v2  ;;  %p351_p12 = pnand %p350_p11, %p469_p5  ;;  %p357_p1 = scmp.lt.s32.totalorder %s355_s23, %s349_s21 }
  0x1d   : > { %p352_p13 = pneg %p351_p12  ;;  %p358_p2 = por %p357_p1, %p356_p0 }
  0x1f   : > { %p359_p3 = pnand %p358_p2, %p352_p13 }
  0x31   : > { %174 = vperm.xlu0 %344, %v157_v3  }
  0xa8   : > { %v161_v4 = vpop.xlane.xlu0 %160 }
  0xa9   : > { %v162_v5 = vsub.f32 %v156_v1, %v161_v4 }
  0xab   : > { %v163_v7 = vmul.f32 1.442695, %v162_v5 }
  0xad   : > { %345 = vpow2.f32 %v163_v7 }
  0xb0   : > { %v175_v9 = vpop.permute.xlu0 %174 }
  0xb1   : > { %vm176_vm1 = vcmp.eq.s32.totalorder %v172_v8, %v175_v9 }
  0xb2   : > { %v177_v11 = vsel %vm176_vm1, -0.802, %v414_v10 }
  0xb3   : > { %v178_v12 = vmul.f32 %v177_v11, %v156_v1 }
  0xb5   : > { %v179_v15 = vsel %vm158_vm0, %v178_v12, 0.0 }
  0xb7   : > { %v346_v13 = vpop.eup %345 }
  0xb8   : > { %v165_v14 = vsel %vm158_vm0, %v346_v13, 0.0 }
  0xb9   : > { %166 = vadd.xlane.f32.xlu1 %v165_v14 }
  0xbd   : > { %180 = vadd.xlane.f32.xlu1 %v179_v15 }
 0x146   : > { %v167_v16 = vpop.xlane.xlu1 %166 }
 0x147   : > { %347 = vlog2.f32 %v167_v16 }
 0x14a   : > { %v181_v23 = vpop.xlane.xlu1 %180 }
 0x151   : > { %v348_v19 = vpop.eup %347 }
 0x152   : > { %v169_v20 = vmul.f32 0.6931472, %v348_v19 }
 0x154   : > { %v170_v22 = vadd.f32 %v169_v20, %v161_v4 }
 0x156   : > { %v182_v24 = vmul.f32 0.8, %v170_v22 }
 0x158   : > { %v183_v25 = vadd.f32 %v182_v24, %v181_v23 }
 0x15a   : > { %v190_v26 = vsel %vm189_vm2, %v183_v25, 0.0 }
 0x15b   : > { %v192_v27 = vsel %vm191_vm3, %v190_v26, 0.0 }
 0x15c   : > { %193 = vadd.xlane.f32.xlu1 %v192_v27 }
 0x1e9   : > { %v194_v28 = vpop.xlane.xlu1 %193 }
 0x1ea   : > { %v195_v29 = vrot.slane %v194_v28, 4 }
 0x1ec   : > { %v196_v30 = vadd.f32 %v195_v29, %v194_v28 }
 0x1ee   : > { %v197_v31 = vrot.slane %v196_v30, 2 }
 0x1f0   : > { %v198_v32 = vadd.f32 %v197_v31, %v196_v30 }
 0x1f2   : > { %v199_v33 = vrot.slane %v198_v32, 1 }
 0x1f4   : > { %v200_v34 = vadd.f32 %v199_v33, %v198_v32 }
 0x1f6   : > { %301 = vpush %v200_v34 }
 0x227   : > { %s302_s7 = spop %301 }
 0x228   : > { %v202_v35 = vstv %s302_s7 }
 0x229   : > { %203 = vst [vmem:[%s147_s4] sm:$0xff] %v202_v35 }
 0x22a   : > { %362 = shalt.err (!%p359_p3)
}
 0x22b   : > { %s363_s24 = scalar_lea.hbm %s498_s16, 128  ;;  %s367_s27 = scalar_lea.hbm %s540_s2, 384 }
 0x22c   : > { %p364_p4 = scmp.ne.s32.totalorder %s498_s16, %s363_s24  ;;  %p368_p9 = scmp.lt.u32.totalorder %s498_s16, %s540_s2 }
 0x22d   : > { %p369_p10 = scmp.lt.u32.totalorder %s367_s27, %s363_s24  ;;  %p371_p12 = scmp.lt.u32.totalorder %s363_s24, %s498_s16 }
 0x22e   : > { %p365_p7 = pnand %p364_p4, %p469_p5 }
 0x22f   : > { %p370_p11 = por %p369_p10, %p368_p9 }
 0x230   : > { %p366_p8 = pneg %p365_p7 }
 0x231   : > { %p372_p13 = por %p371_p12, %p370_p11 }
 0x233   : > { %p373_p0 = pnand %p372_p13, %p366_p8 }
 0x235   : > { %376 = shalt.err (!%p373_p0)
}
 0x236   : > { %303 = dma.vmem_to_hbm [thread:$0]  (%p469_p5), %s493_s5, 128, %s498_s16, %s205_s17  }
 0x237 PF: > { %p309_p1 = scmp.ge.s32.totalorder %s411_s12, 2  ;;  %s230_s30 = sand.u32 1, %s399_s9  }
 0x238   : > { %s231_s3 = scalar_lea.sflag [#allocation3], %s230_s30 }
 0x239   : > { %p306_p2 = pnand %p309_p1, %p473_p6 }
 0x23b   : > { %394 = dma.done.wait (!%p306_p2), %s231_s3, 128  }
 0x23c   : > { %396 = vsyncadd (!%p306_p2), %s231_s3, 4294967168  ;;  %p12_p3 = scmp.ge.s32.totalorder %s456_s15, 5   ;;  %s543_s9 = smov %s403_s10 }
 0x23d   : > { %s544_s10 = smov %s407_s11  ;;  %s545_s11 = smov %s467_s18 }
 0x23e   : > { %s546_s12 = smov %s456_s15  ;;  %14 = sbr.rel (!%p12_p3) target bundleno = 3 (0x3), region = 66 }
 0x245   :  { %236 = vsyncpa [#allocation3], 1 }
 0x246   :  { %238 = vsyncpa [#allocation3 + $0x1], 1 }

</bundles_post_ra>
